<compile_context>
chip_gen: v5e
topology: v5e:2x2
jax: 0.10.0
libtpu: 0.0.40
codegen_flags: <defaults>
</compile_context>

<pallas_src>
import functools

import jax
import jax.numpy as jnp
from jax.experimental import pallas as pl
from jax.experimental.pallas import tpu as pltpu

IN_RAW = 784       # input features; 784 = 49 * 16 bf16 sublane packs, no padding needed
H1 = 128
H2_RAW = 64
H2_PAD = 128       # lane-dense hidden-2 (zero-padded cols/rows contribute exactly 0)
OUT_RAW = 10
OUT_PAD = 128      # lane-dense output tile; cols 10..127 are zero


def mlp_kernel(x_ref, w1_ref, b1_ref, w2_ref, b2_ref, w3_ref, b3_ref, o_ref):
    # x streams in as raw f32 (no host-side pad/cast pass); cast to bf16 on the
    # VPU (free -- the kernel is HBM-bound) so all three matmuls run bf16 on
    # the MXU with f32 accumulation.
    x = x_ref[...].astype(jnp.bfloat16)

    h1 = jnp.dot(x, w1_ref[...], preferred_element_type=jnp.float32) + b1_ref[...]
    h1 = jnp.maximum(h1, 0.0).astype(jnp.bfloat16)

    h2 = jnp.dot(h1, w2_ref[...], preferred_element_type=jnp.float32) + b2_ref[...]
    h2 = jnp.maximum(h2, 0.0).astype(jnp.bfloat16)

    out = jnp.dot(h2, w3_ref[...], preferred_element_type=jnp.float32) + b3_ref[...]
    o_ref[...] = out.astype(o_ref.dtype)          # bf16, lane-dense (TB, 128) store


def prepare_params(params):
    """Cast nn.Linear-style params ((in,out) weights, (1,out) biases) into the
    lane-dense bf16/f32 layout consumed by the kernel. All padding is zeros,
    so it contributes exactly zero to every dot product."""
    w1, b1, w2, b2, w3, b3 = params

    # Layer 1: no K padding (784 kept as-is).
    w1p = w1.astype(jnp.bfloat16)                                   # (784, 128)
    b1p = b1.astype(jnp.float32).reshape(1, H1)

    # Layer 2: pad N 64 -> 128 with zero columns (h2 pad cols become ReLU(0)=0).
    w2p = jnp.zeros((H1, H2_PAD), jnp.bfloat16).at[:, :H2_RAW].set(
        w2.astype(jnp.bfloat16))
    b2p = jnp.zeros((1, H2_PAD), jnp.float32).at[:, :H2_RAW].set(
        b2.astype(jnp.float32).reshape(1, H2_RAW))

    # Layer 3: pad K 64 -> 128 with zero rows, N 10 -> 128 with zero columns.
    w3p = jnp.zeros((H2_PAD, OUT_PAD), jnp.bfloat16).at[:H2_RAW, :OUT_RAW].set(
        w3.astype(jnp.bfloat16))
    b3p = jnp.zeros((1, OUT_PAD), jnp.float32).at[:, :OUT_RAW].set(
        b3.astype(jnp.float32).reshape(1, OUT_RAW))

    return (w1p, b1p, w2p, b2p, w3p, b3p)


def _round_up(x, m):
    return ((x + m - 1) // m) * m


@functools.partial(jax.jit, static_argnames=("max_tile",))
def digit_classifier_forward(x, prepared_params, *, max_tile=1024):
    """x: any shape whose trailing dims flatten to 784 (e.g. (B, 1, 28, 28)).
    prepared_params: output of prepare_params(). Returns (B, 10) f32 logits."""
    w1p, b1p, w2p, b2p, w3p, b3p = prepared_params

    x2d = x.reshape(-1, IN_RAW)                 # raw f32, no pad / cast prepass
    B = x2d.shape[0]

    # Batch tile: >= 2 grid steps whenever B >= 16 so v7x's two TensorCores
    # both get work; large tiles amortize the ~0.35 us/step overhead.
    TB = min(max_tile, max(8, _round_up(pl.cdiv(B, 2), 8)))
    grid = (pl.cdiv(B, TB),)
    # Ragged last batch block is handled by Pallas masking; garbage rows (if
    # any) are never read because we slice [:B] below.

    weights_b = (IN_RAW * H1 + H1 * H2_PAD + H2_PAD * OUT_PAD) * 2 \
                + (H1 + H2_PAD + OUT_PAD) * 4
    x_tile_b = TB * IN_RAW * 4                  # f32 input tile
    out_tile_b = TB * OUT_PAD * 2               # bf16 output tile
    interm_b = TB * (H1 + H2_PAD + OUT_PAD) * 4 * 2
    vmem_limit = max(16 * 1024 * 1024,
                     2 * (x_tile_b + out_tile_b + weights_b) + interm_b
                     + 4 * 1024 * 1024)

    cost = pl.CostEstimate(
        flops=2 * B * (IN_RAW * H1 + H1 * H2_PAD + H2_PAD * OUT_PAD),
        transcendentals=0,
        bytes_accessed=B * IN_RAW * 4 + weights_b + B * OUT_PAD * 2,
    )

    out_pad = pl.pallas_call(
        mlp_kernel,
        out_shape=jax.ShapeDtypeStruct((B, OUT_PAD), jnp.bfloat16),
        grid=grid,
        in_specs=[
            pl.BlockSpec((TB, IN_RAW), lambda i: (i, 0)),       # x tile streams (f32)
            pl.BlockSpec((IN_RAW, H1), lambda i: (0, 0)),       # weights stay resident
            pl.BlockSpec((1, H1), lambda i: (0, 0)),
            pl.BlockSpec((H1, H2_PAD), lambda i: (0, 0)),
            pl.BlockSpec((1, H2_PAD), lambda i: (0, 0)),
            pl.BlockSpec((H2_PAD, OUT_PAD), lambda i: (0, 0)),
            pl.BlockSpec((1, OUT_PAD), lambda i: (0, 0)),
        ],
        out_specs=pl.BlockSpec((TB, OUT_PAD), lambda i: (i, 0)),
        compiler_params=pltpu.CompilerParams(
            dimension_semantics=("parallel",),
            vmem_limit_bytes=int(vmem_limit),
        ),
        cost_estimate=cost,
    )(x2d, w1p, b1p, w2p, b2p, w3p, b3p)

    # Tiny slice + cast; fused inside this jit, no extra HBM pass of note.
    return out_pad[:B, :OUT_RAW].astype(jnp.float32)


def init_params(key):
    """Deterministic init matching nn.Linear shapes (stored as (in, out))."""
    k1, k2, k3, k4, k5, k6 = jax.random.split(key, 6)

    def lin(kw, kb, fan_in, fan_out):
        bound = 1.0 / jnp.sqrt(fan_in)
        w = jax.random.uniform(kw, (fan_in, fan_out), jnp.float32, -bound, bound)
        b = jax.random.uniform(kb, (1, fan_out), jnp.float32, -bound, bound)
        return w, b

    w1, b1 = lin(k1, k2, IN_RAW, H1)
    w2, b2 = lin(k3, k4, H1, H2_RAW)
    w3, b3 = lin(k5, k6, H2_RAW, OUT_RAW)
    return (w1, b1, w2, b2, w3, b3)


def reference_forward(x, params):
    """Pure-JAX reference mirroring the kernel's bf16-weight / f32-accumulate
    numerics (inputs & weights quantized to bf16, math in f32)."""
    w1, b1, w2, b2, w3, b3 = params
    q = lambda a: a.astype(jnp.bfloat16).astype(jnp.float32)

    x2d = q(x.reshape(-1, IN_RAW))
    h1 = jnp.maximum(x2d @ q(w1) + b1, 0.0)
    h2 = jnp.maximum(q(h1) @ q(w2) + b2, 0.0)
    return q(h2) @ q(w3) + b3


if __name__ == "__main__":
    key = jax.random.PRNGKey(0)
    kx, kp = jax.random.split(key)

    # MNIST-like NCHW input: (batch=8, channels=1, 28, 28)
    x = jax.random.normal(kx, (8, 1, 28, 28), dtype=jnp.float32)
    params = init_params(kp)
    prepared = prepare_params(params)

    out = digit_classifier_forward(x, prepared)
    out = jax.block_until_ready(out)

    ref = reference_forward(x, params)
    assert out.shape == (8, 10), f"bad shape {out.shape}"
    # Output is bf16 inside the kernel (~3 significant digits), so use a
    # tolerance compatible with bf16 logits.
    assert jnp.allclose(out, ref, atol=2e-2, rtol=2e-2), "mismatch vs reference"

    print("KERNEL_OK")
</pallas_src>

<mosaic_0001>
module attributes {stable_mosaic.version = 11 : i64} {
  func.func @mlp_kernel(%arg0: i32, %arg1: memref<8x784xf32, #tpu.memory_space<vmem>>, %arg2: memref<784x128xbf16, #tpu.memory_space<vmem>>, %arg3: memref<1x128xf32, #tpu.memory_space<vmem>>, %arg4: memref<128x128xbf16, #tpu.memory_space<vmem>>, %arg5: memref<1x128xf32, #tpu.memory_space<vmem>>, %arg6: memref<128x128xbf16, #tpu.memory_space<vmem>>, %arg7: memref<1x128xf32, #tpu.memory_space<vmem>>, %arg8: memref<8x128xbf16, #tpu.memory_space<vmem>>) attributes {dimension_semantics = [#tpu.dimension_semantics<parallel>], iteration_bounds = array<i64: 1>, scalar_prefetch = 0 : i64, scratch_operands = 0 : i64, tpu.core_type = #tpu.core_type<tc>, window_params = [{transform_indices = @transform_0, window_bounds = array<i64: 8, 784>}, {pipeline_mode = #tpu.pipeline_mode<synchronous>, transform_indices = @transform_1, window_bounds = array<i64: 784, 128>}, {pipeline_mode = #tpu.pipeline_mode<synchronous>, transform_indices = @transform_2, window_bounds = array<i64: 1, 128>}, {pipeline_mode = #tpu.pipeline_mode<synchronous>, transform_indices = @transform_3, window_bounds = array<i64: 128, 128>}, {pipeline_mode = #tpu.pipeline_mode<synchronous>, transform_indices = @transform_4, window_bounds = array<i64: 1, 128>}, {pipeline_mode = #tpu.pipeline_mode<synchronous>, transform_indices = @transform_5, window_bounds = array<i64: 128, 128>}, {pipeline_mode = #tpu.pipeline_mode<synchronous>, transform_indices = @transform_6, window_bounds = array<i64: 1, 128>}, {transform_indices = @transform_7, window_bounds = array<i64: 8, 128>}]} {
    %c0 = arith.constant 0 : index
    %c0_0 = arith.constant 0 : index
    %0 = vector.load %arg1[%c0, %c0_0] : memref<8x784xf32, #tpu.memory_space<vmem>>, vector<8x784xf32>
    %1 = arith.truncf %0 : vector<8x784xf32> to vector<8x784xbf16>
    %c0_1 = arith.constant 0 : index
    %c0_2 = arith.constant 0 : index
    %2 = vector.load %arg2[%c0_1, %c0_2] : memref<784x128xbf16, #tpu.memory_space<vmem>>, vector<784x128xbf16>
    %cst = arith.constant dense<0.000000e+00> : vector<8x128xf32>
    %3 = tpu.matmul %1, %2, %cst {dimension_numbers = #tpu.dot_dimension_numbers<[1], [0], [0], [1], [0, 0, 1, 1], [], []>} : vector<8x784xbf16>, vector<784x128xbf16>, vector<8x128xf32> -> vector<8x128xf32>
    %c0_3 = arith.constant 0 : index
    %c0_4 = arith.constant 0 : index
    %4 = vector.load %arg3[%c0_3, %c0_4] : memref<1x128xf32, #tpu.memory_space<vmem>>, vector<1x128xf32>
    %5 = vector.broadcast %4 : vector<1x128xf32> to vector<8x128xf32>
    %6 = arith.addf %3, %5 : vector<8x128xf32>
    %cst_5 = arith.constant 0.000000e+00 : f32
    %7 = vector.broadcast %cst_5 : f32 to vector<8x128xf32>
    %8 = arith.maximumf %6, %7 : vector<8x128xf32>
    %9 = arith.truncf %8 : vector<8x128xf32> to vector<8x128xbf16>
    %c0_6 = arith.constant 0 : index
    %c0_7 = arith.constant 0 : index
    %10 = vector.load %arg4[%c0_6, %c0_7] : memref<128x128xbf16, #tpu.memory_space<vmem>>, vector<128x128xbf16>
    %cst_8 = arith.constant dense<0.000000e+00> : vector<8x128xf32>
    %11 = tpu.matmul %9, %10, %cst_8 {dimension_numbers = #tpu.dot_dimension_numbers<[1], [0], [0], [1], [0, 0, 1, 1], [], []>} : vector<8x128xbf16>, vector<128x128xbf16>, vector<8x128xf32> -> vector<8x128xf32>
    %c0_9 = arith.constant 0 : index
    %c0_10 = arith.constant 0 : index
    %12 = vector.load %arg5[%c0_9, %c0_10] : memref<1x128xf32, #tpu.memory_space<vmem>>, vector<1x128xf32>
    %13 = vector.broadcast %12 : vector<1x128xf32> to vector<8x128xf32>
    %14 = arith.addf %11, %13 : vector<8x128xf32>
    %cst_11 = arith.constant 0.000000e+00 : f32
    %15 = vector.broadcast %cst_11 : f32 to vector<8x128xf32>
    %16 = arith.maximumf %14, %15 : vector<8x128xf32>
    %17 = arith.truncf %16 : vector<8x128xf32> to vector<8x128xbf16>
    %c0_12 = arith.constant 0 : index
    %c0_13 = arith.constant 0 : index
    %18 = vector.load %arg6[%c0_12, %c0_13] : memref<128x128xbf16, #tpu.memory_space<vmem>>, vector<128x128xbf16>
    %cst_14 = arith.constant dense<0.000000e+00> : vector<8x128xf32>
    %19 = tpu.matmul %17, %18, %cst_14 {dimension_numbers = #tpu.dot_dimension_numbers<[1], [0], [0], [1], [0, 0, 1, 1], [], []>} : vector<8x128xbf16>, vector<128x128xbf16>, vector<8x128xf32> -> vector<8x128xf32>
    %c0_15 = arith.constant 0 : index
    %c0_16 = arith.constant 0 : index
    %20 = vector.load %arg7[%c0_15, %c0_16] : memref<1x128xf32, #tpu.memory_space<vmem>>, vector<1x128xf32>
    %21 = vector.broadcast %20 : vector<1x128xf32> to vector<8x128xf32>
    %22 = arith.addf %19, %21 : vector<8x128xf32>
    %23 = arith.truncf %22 : vector<8x128xf32> to vector<8x128xbf16>
    %c0_17 = arith.constant 0 : index
    %c0_18 = arith.constant 0 : index
    %24 = vector.load %arg8[%c0_17, %c0_18] : memref<8x128xbf16, #tpu.memory_space<vmem>>, vector<8x128xbf16>
    tpu.vector_store %arg8[%c0_17, %c0_18], %23 {strides = array<i32>} : memref<8x128xbf16, #tpu.memory_space<vmem>>, vector<8x128xbf16>,
    return
  }
  func.func @transform_0(%arg0: i32) -> (i32, i32) {
    %c0_i32 = arith.constant 0 : i32
    %c0_i32_0 = arith.constant 0 : i32
    return %arg0, %c0_i32 : i32, i32
  }
  func.func @transform_1(%arg0: i32) -> (i32, i32) {
    %c0_i32 = arith.constant 0 : i32
    %c0_i32_0 = arith.constant 0 : i32
    %c0_i32_1 = arith.constant 0 : i32
    return %c0_i32, %c0_i32_0 : i32, i32
  }
  func.func @transform_2(%arg0: i32) -> (i32, i32) {
    %c0_i32 = arith.constant 0 : i32
    %c0_i32_0 = arith.constant 0 : i32
    %c0_i32_1 = arith.constant 0 : i32
    return %c0_i32, %c0_i32_0 : i32, i32
  }
  func.func @transform_3(%arg0: i32) -> (i32, i32) {
    %c0_i32 = arith.constant 0 : i32
    %c0_i32_0 = arith.constant 0 : i32
    %c0_i32_1 = arith.constant 0 : i32
    return %c0_i32, %c0_i32_0 : i32, i32
  }
  func.func @transform_4(%arg0: i32) -> (i32, i32) {
    %c0_i32 = arith.constant 0 : i32
    %c0_i32_0 = arith.constant 0 : i32
    %c0_i32_1 = arith.constant 0 : i32
    return %c0_i32, %c0_i32_0 : i32, i32
  }
  func.func @transform_5(%arg0: i32) -> (i32, i32) {
    %c0_i32 = arith.constant 0 : i32
    %c0_i32_0 = arith.constant 0 : i32
    %c0_i32_1 = arith.constant 0 : i32
    return %c0_i32, %c0_i32_0 : i32, i32
  }
  func.func @transform_6(%arg0: i32) -> (i32, i32) {
    %c0_i32 = arith.constant 0 : i32
    %c0_i32_0 = arith.constant 0 : i32
    %c0_i32_1 = arith.constant 0 : i32
    return %c0_i32, %c0_i32_0 : i32, i32
  }
  func.func @transform_7(%arg0: i32) -> (i32, i32) {
    %c0_i32 = arith.constant 0 : i32
    %c0_i32_0 = arith.constant 0 : i32
    return %arg0, %c0_i32 : i32, i32
  }
}

</mosaic_0001>

<bundles_post_ra>
// kernel: digit_classifier_forward.1
= control target key start
LH: loop header
LB: loop body
LE: loop exit
PB: predicated region body
PF: predicated region fallthrough
CT: control target
= control target key end

     0   :  { %vm437_vm0 = vcmask 130048   ;;  %s1301_s1 = inlined_call_operand.vmem [shape: bf16[784,128], index: 1, kind: input, shape index: {}]   ;;  %s1302_s2 = inlined_call_operand.vmem [shape: f32[1,128], index: 2, kind: input, shape index: {}]   ;;  %s1303_s0 = inlined_call_operand.vmem [shape: f32[8,784], index: 0, kind: input, shape index: {}]   ;;  %s1304_s4 = inlined_call_operand.vmem [shape: f32[1,128], index: 4, kind: input, shape index: {}]   ;;  %s1305_s3 = inlined_call_operand.vmem [shape: bf16[128,128], index: 3, kind: input, shape index: {}]   ;;  %s1306_s5 = inlined_call_operand.vmem [shape: bf16[128,128], index: 5, kind: input, shape index: {}]   ;;  %s1307_s6 = inlined_call_operand.vmem [shape: f32[1,128], index: 6, kind: input, shape index: {}]   ;;  %s1308_s7 = inlined_call_operand.vmem [shape: bf16[8,128], index: 7, kind: output, shape index: {}]  }
   0x1   :  { %v972_v0 = vld [vmem:[%s1301_s1 + $0x38] sm:$0xff]  ;;  %v971_v3 = vld [vmem:[%s1301_s1 + $0x30] sm:$0xff]  ;;  %v970_v8 = vld [vmem:[%s1301_s1 + $0x28] sm:$0xff] }
   0x2   :  { %v980_v1 = vld [vmem:[%s1301_s1 + $0x78] sm:$0xff]  ;;  %441 = vmatpush.bf16.msra.mxu0 %v972_v0  ;;  %v979_v4 = vld [vmem:[%s1301_s1 + $0x70] sm:$0xff]  ;;  %v978_v9 = vld [vmem:[%s1301_s1 + $0x68] sm:$0xff] }
   0x3   :  { %v988_v2 = vld [vmem:[%s1301_s1 + $0xb8] sm:$0xff]  ;;  %454 = vmatpush.bf16.msra.mxu1 %v980_v1  ;;  %v987_v5 = vld [vmem:[%s1301_s1 + $0xb0] sm:$0xff]  ;;  %v986_v10 = vld [vmem:[%s1301_s1 + $0xa8] sm:$0xff] }
   0x4   :  { %467 = vmatpush.bf16.msra.mxu2 %v988_v2  ;;  %v996_v6 = vld [vmem:[%s1301_s1 + $0xf8] sm:$0xff]  ;;  %v995_v7 = vld [vmem:[%s1301_s1 + $0xf0] sm:$0xff]  ;;  %v994_v11 = vld [vmem:[%s1301_s1 + $0xe8] sm:$0xff] }
   0x5   :  { %480 = vmatpush.bf16.msra.mxu3 %v996_v6  ;;  %v969_v12 = vld [vmem:[%s1301_s1 + $0x20] sm:$0xff]  ;;  %v968_v16 = vld [vmem:[%s1301_s1 + $0x18] sm:$0xff]  ;;  %v967_v20 = vld [vmem:[%s1301_s1 + $0x10] sm:$0xff] }
   0x6   :  { %442 = vmatpush.bf16.msra.mxu0 %v971_v3  ;;  %v977_v13 = vld [vmem:[%s1301_s1 + $0x60] sm:$0xff]  ;;  %v976_v17 = vld [vmem:[%s1301_s1 + $0x58] sm:$0xff]  ;;  %v975_v21 = vld [vmem:[%s1301_s1 + $0x50] sm:$0xff] }
   0x7   :  { %455 = vmatpush.bf16.msra.mxu1 %v979_v4  ;;  %v985_v14 = vld [vmem:[%s1301_s1 + $0xa0] sm:$0xff]  ;;  %v984_v18 = vld [vmem:[%s1301_s1 + $0x98] sm:$0xff]  ;;  %v983_v22 = vld [vmem:[%s1301_s1 + $0x90] sm:$0xff] }
   0x8   :  { %468 = vmatpush.bf16.msra.mxu2 %v987_v5  ;;  %v993_v15 = vld [vmem:[%s1301_s1 + $0xe0] sm:$0xff]  ;;  %v992_v19 = vld [vmem:[%s1301_s1 + $0xd8] sm:$0xff]  ;;  %v991_v23 = vld [vmem:[%s1301_s1 + $0xd0] sm:$0xff] }
   0x9   :  { %481 = vmatpush.bf16.msra.mxu3 %v995_v7  ;;  %v966_v24 = vld [vmem:[%s1301_s1 + $0x8] sm:$0xff]  ;;  %v965_v27 = vld [vmem:[%s1301_s1] sm:$0xff]  ;;  %v1004_v32 = vld [vmem:[%s1301_s1 + $0x138] sm:$0xff] }
   0xa   :  { %443 = vmatpush.bf16.msra.mxu0 %v970_v8  ;;  %v974_v25 = vld [vmem:[%s1301_s1 + $0x48] sm:$0xff]  ;;  %v973_v29 = vld [vmem:[%s1301_s1 + $0x40] sm:$0xff]  ;;  %v1012_v33 = vld [vmem:[%s1301_s1 + $0x178] sm:$0xff] }
   0xb   :  { %456 = vmatpush.bf16.msra.mxu1 %v978_v9  ;;  %v982_v26 = vld [vmem:[%s1301_s1 + $0x88] sm:$0xff]  ;;  %v27_v30 = vld [vmem:[%s1303_s0] sm:$0xff]  ;;  %v29_v35 = vld [vmem:[%s1303_s0 + $0x10] sm:$0xff] }
   0xc   :  { %469 = vmatpush.bf16.msra.mxu2 %v986_v10  ;;  %v990_v28 = vld [vmem:[%s1301_s1 + $0xc8] sm:$0xff]  ;;  %v981_v34 = vld [vmem:[%s1301_s1 + $0x80] sm:$0xff]  ;;  %v34_v36 = vpack.c.bf16 %v27_v30, %v27_v30  ;;  %v30_v40 = vld [vmem:[%s1303_s0 + $0x18] sm:$0xff]  ;;  %v36_v43 = vpack.c.bf16 %v29_v35, %v29_v35 }
   0xd   :  { %482 = vmatpush.bf16.msra.mxu3 %v994_v11  ;;  %v28_v31 = vld [vmem:[%s1303_s0 + $0x8] sm:$0xff]  ;;  %v989_v38 = vld [vmem:[%s1301_s1 + $0xc0] sm:$0xff]  ;;  %v1003_v41 = vld [vmem:[%s1301_s1 + $0x130] sm:$0xff]  ;;  %v37_v44 = vpack.c.bf16 %v30_v40, %v30_v40 }
   0xe   :  { %444 = vmatpush.bf16.msra.mxu0 %v969_v12  ;;  %v35_v37 = vpack.c.bf16 %v28_v31, %v28_v31  ;;  %v1013_v39 = vld [vmem:[%s1301_s1 + $0x180] sm:$0xff]  ;;  %v1011_v42 = vld [vmem:[%s1301_s1 + $0x170] sm:$0xff]  ;;  %v1002_v45 = vld [vmem:[%s1301_s1 + $0x128] sm:$0xff] }
   0xf   :  { %457 = vmatpush.bf16.msra.mxu1 %v977_v13  ;;  %v1010_v46 = vld [vmem:[%s1301_s1 + $0x168] sm:$0xff]  ;;  %v1001_v47 = vld [vmem:[%s1301_s1 + $0x120] sm:$0xff]  ;;  %v1000_v49 = vld [vmem:[%s1301_s1 + $0x118] sm:$0xff] }
  0x10   :  { %470 = vmatpush.bf16.msra.mxu2 %v985_v14  ;;  %v1009_v48 = vld [vmem:[%s1301_s1 + $0x160] sm:$0xff]  ;;  %v1008_v50 = vld [vmem:[%s1301_s1 + $0x158] sm:$0xff]  ;;  %v33_v51 = vld [vmem:[%s1303_s0 + $0x30] sm:$0xff] }
  0x11   :  { %483 = vmatpush.bf16.msra.mxu3 %v993_v15  ;;  %v999_v52 = vld [vmem:[%s1301_s1 + $0x110] sm:$0xff]  ;;  %v40_v54 = vpack.c.bf16 %v33_v51, %v33_v51  ;;  %v998_v55 = vld [vmem:[%s1301_s1 + $0x108] sm:$0xff]  ;;  %v997_v57 = vld [vmem:[%s1301_s1 + $0x100] sm:$0xff] }
  0x12   :  { %445 = vmatpush.bf16.msra.mxu0 %v968_v16  ;;  %v1007_v53 = vld [vmem:[%s1301_s1 + $0x150] sm:$0xff]  ;;  %v1006_v56 = vld [vmem:[%s1301_s1 + $0x148] sm:$0xff]  ;;  %v1005_v58 = vld [vmem:[%s1301_s1 + $0x140] sm:$0xff] }
  0x13   :  { %458 = vmatpush.bf16.msra.mxu1 %v976_v17  ;;  %v31_v59 = vld [vmem:[%s1303_s0 + $0x20] sm:$0xff]  ;;  %v32_v60 = vld [vmem:[%s1303_s0 + $0x28] sm:$0xff]  ;;  %v1021_v63 = vld [vmem:[%s1305_s3 + $0x38] sm:$0xff] }
  0x14   :  { %471 = vmatpush.bf16.msra.mxu2 %v984_v18  ;;  %v38_v61 = vpack.c.bf16 %v31_v59, %v31_v59  ;;  %v39_v62 = vpack.c.bf16 %v32_v60, %v32_v60  ;;  %v1020_v0 = vld [vmem:[%s1305_s3 + $0x30] sm:$0xff]  ;;  %v1019_v1 = vld [vmem:[%s1305_s3 + $0x28] sm:$0xff]  ;;  %v1018_v2 = vld [vmem:[%s1305_s3 + $0x20] sm:$0xff] }
  0x15   :  { %484 = vmatpush.bf16.msra.mxu3 %v992_v19  ;;  %v1017_v3 = vld [vmem:[%s1305_s3 + $0x18] sm:$0xff]  ;;  %v1016_v4 = vld [vmem:[%s1305_s3 + $0x10] sm:$0xff]  ;;  %v1015_v5 = vld [vmem:[%s1305_s3 + $0x8] sm:$0xff] }
  0x16   :  { %446 = vmatpush.bf16.msra.mxu0 %v967_v20  ;;  %v1014_v8 = vld [vmem:[%s1305_s3] sm:$0xff]  ;;  %v1029_v11 = vld [vmem:[%s1306_s5 + $0x38] sm:$0xff]  ;;  %v1028_v14 = vld [vmem:[%s1306_s5 + $0x30] sm:$0xff] }
  0x17   :  { %459 = vmatpush.bf16.msra.mxu1 %v975_v21  ;;  %v1030_v15 = vld [vmem:[%s1302_s2] ss:$0 sm:$0xff]  ;;  %v1027_v16 = vld [vmem:[%s1306_s5 + $0x28] sm:$0xff] }
  0x18   :  { %472 = vmatpush.bf16.msra.mxu2 %v983_v22  ;;  %v1026_v20 = vld [vmem:[%s1306_s5 + $0x20] sm:$0xff]  ;;  %v1025_v22 = vld [vmem:[%s1306_s5 + $0x18] sm:$0xff] }
  0x19   :  { %485 = vmatpush.bf16.msra.mxu3 %v991_v23 }
  0x1a   :  { %447 = vmatpush.bf16.msra.mxu0 %v966_v24 }
  0x1b   :  { %460 = vmatpush.bf16.msra.mxu1 %v974_v25  ;;  %v1024_v25 = vld [vmem:[%s1306_s5 + $0x10] sm:$0xff] }
  0x1c   :  { %473 = vmatpush.bf16.msra.mxu2 %v982_v26 }
  0x1d   :  { %486 = vmatpush.bf16.msra.mxu3 %v990_v28 }
  0x1e   :  { %448 = vmatpush.bf16.msra.mxu0 %v965_v27 }
  0x1f   :  { %461 = vmatpush.bf16.msra.mxu1 %v973_v29 }
  0x20   :  { %474 = vmatpush.bf16.msra.mxu2 %v981_v34 }
  0x21   :  { %449 = vmatmul.bf16.vlgmr.msra.gmra.mxu0 %v34_v36  ;;  %487 = vmatpush.bf16.msra.mxu3 %v989_v38  ;;  %v1022_v38 = vld [vmem:[%s1306_s5] sm:$0xff] }
  0x22   :  { %493 = vmatpush.bf16.msrb.mxu0 %v1004_v32  ;;  %462 = vmatmul.bf16.vlgmr.msra.gmra.mxu1 %v35_v37  ;;  %v1023_v37 = vld [vmem:[%s1306_s5 + $0x8] sm:$0xff] }
  0x23   :  { %506 = vmatpush.bf16.msrb.mxu1 %v1012_v33  ;;  %475 = vmatmul.bf16.vlgmr.msra.gmra.mxu2 %v36_v43 }
  0x24   :  { %526 = vmatpush.bf16.msrb.mxu2 %v1013_v39  ;;  %488 = vmatmul.bf16.vlgmr.msra.gmra.mxu3 %v37_v44  ;;  %v1031_v39 = vld [vmem:[%s1304_s4] ss:$0 sm:$0xff] }
  0x25   :  { %602 = vmatpush.bf16.msrb.mxu3 %v1021_v63 }
  0x26   :  { %494 = vmatpush.bf16.msrb.mxu0 %v1003_v41 }
  0x27   :  { %507 = vmatpush.bf16.msrb.mxu1 %v1011_v42 }
  0x28   :  { %685 = vmatpush.bf16.msra.mxu2 %v1029_v11 }
  0x29   :  { %603 = vmatpush.bf16.msrb.mxu3 %v1020_v0 }
  0x2a   :  { %495 = vmatpush.bf16.msrb.mxu0 %v1002_v45  ;;  %v1032_v45 = vld [vmem:[%s1307_s6] ss:$0 sm:$0xff] }
  0x2b   :  { %508 = vmatpush.bf16.msrb.mxu1 %v1010_v46 }
  0x2c   :  { %686 = vmatpush.bf16.msra.mxu2 %v1028_v14 }
  0x2d   :  { %604 = vmatpush.bf16.msrb.mxu3 %v1019_v1 }
  0x2e   :  { %496 = vmatpush.bf16.msrb.mxu0 %v1001_v47 }
  0x2f   :  { %509 = vmatpush.bf16.msrb.mxu1 %v1009_v48 }
  0x30   :  { %687 = vmatpush.bf16.msra.mxu2 %v1027_v16 }
  0x31   :  { %605 = vmatpush.bf16.msrb.mxu3 %v1018_v2 }
  0x32   :  { %497 = vmatpush.bf16.msrb.mxu0 %v1000_v49 }
  0x33   :  { %510 = vmatpush.bf16.msrb.mxu1 %v1008_v50  ;;  %900 = vmatmul.msk.bf16.vlgmr.msrb.gmra.mxu2 %vm437_vm0, %v40_v54 }
  0x34   :  { %688 = vmatpush.bf16.msra.mxu2 %v1026_v20 }
  0x35   :  { %606 = vmatpush.bf16.msrb.mxu3 %v1017_v3 }
  0x36   :  { %498 = vmatpush.bf16.msrb.mxu0 %v999_v52 }
  0x37   :  { %511 = vmatpush.bf16.msrb.mxu1 %v1007_v53 }
  0x38   :  { %689 = vmatpush.bf16.msra.mxu2 %v1025_v22 }
  0x39   :  { %607 = vmatpush.bf16.msrb.mxu3 %v1016_v4 }
  0x3a   :  { %499 = vmatpush.bf16.msrb.mxu0 %v998_v55 }
  0x3b   :  { %512 = vmatpush.bf16.msrb.mxu1 %v1006_v56 }
  0x3c   :  { %690 = vmatpush.bf16.msra.mxu2 %v1024_v25 }
  0x3d   :  { %608 = vmatpush.bf16.msrb.mxu3 %v1015_v5 }
  0x3e   :  { %500 = vmatpush.bf16.msrb.mxu0 %v997_v57 }
  0x3f   :  { %513 = vmatpush.bf16.msrb.mxu1 %v1005_v58 }
  0x40   :  { %691 = vmatpush.bf16.msra.mxu2 %v1023_v37 }
  0x41   :  { %501 = vmatmul.bf16.vlgmr.msrb.gmra.mxu0 %v38_v61  ;;  %609 = vmatpush.bf16.msrb.mxu3 %v1014_v8 }
  0x42   :  { %514 = vmatmul.bf16.vlgmr.msrb.gmra.mxu1 %v39_v62 }
  0x44   :  { %692 = vmatpush.bf16.msra.mxu2 %v1022_v38 }
  0x9e   :  { %v450_v6 = vpop.f32.mrf.mxu0 }
  0x9f   :  { %v463_v7 = vpop.f32.mrf.mxu1  ;;  %v451_v17 = vadd.f32 %v1030_v15, %v450_v6 }
  0xa1   :  { %v464_v21 = vadd.f32 %v463_v7, %v451_v17 }
  0xa6   :  { %v452_v9 = vpop.f32.mrf.mxu0  ;;  %v476_v12 = vpop.f32.mrf.mxu2 }
  0xa7   :  { %v465_v10 = vpop.f32.mrf.mxu1  ;;  %v489_v13 = vpop.f32.mrf.mxu3  ;;  %v477_v23 = vadd.f32 %v476_v12, %v464_v21 }
  0xa9   :  { %v490_v26 = vadd.f32 %v489_v13, %v477_v23 }
  0xae   :  { %v478_v18 = vpop.f32.mrf.mxu2 }
  0xaf   :  { %v491_v19 = vpop.f32.mrf.mxu3 }
  0xb6   :  { %v528_v24 = vpop.f32.mrf.mxu2 }
  0xbe   :  { %v502_v27 = vpop.f32.mrf.mxu0  ;;  %v530_v31 = vpop.f32.mrf.mxu2 }
  0xbf   :  { %v515_v28 = vpop.f32.mrf.mxu1  ;;  %v503_v29 = vadd.f32 %v502_v27, %v490_v26 }
  0xc1   :  { %v516_v30 = vadd.f32 %v515_v28, %v503_v29 }
  0xc3   :  { %v529_v32 = vadd.f32 %v528_v24, %v516_v30 }
  0xc5   :  { %v532_v33 = vmax.f32 %v529_v32, 0.0 }
  0xc6   :  { %v504_v34 = vpop.f32.mrf.mxu0 }
  0xc7   :  { %v517_v35 = vpop.f32.mrf.mxu1  ;;  %v533_v36 = vpack.c.bf16 %v532_v33, %v532_v33 }
  0xc9   :  { %610 = vmatmul.bf16.vlgmr.msrb.gmra.mxu3 %v533_v36 }
 0x14c   :  { %v611_v40 = vpop.f32.mrf.mxu3 }
 0x14d   :  { %v612_v41 = vadd.f32 %v1031_v39, %v611_v40 }
 0x14f   :  { %v615_v42 = vmax.f32 %v612_v41, 0.0 }
 0x151   :  { %v616_v43 = vpack.c.bf16 %v615_v42, %v615_v42 }
 0x153   :  { %693 = vmatmul.bf16.vlgmr.msra.gmra.mxu2 %v616_v43 }
 0x154   :  { %v613_v44 = vpop.f32.mrf.mxu3 }
 0x1d6   :  { %v694_v46 = vpop.f32.mrf.mxu2 }
 0x1d7   :  { %v695_v47 = vadd.f32 %v1032_v45, %v694_v46 }
 0x1d9   :  { %v698_v48 = vpack.c.bf16 %v695_v47, %v695_v47 }
 0x1db   :  { %699 = vst [vmem:[%s1308_s7] sm:$0xf] %v698_v48 }
 0x1de   :  { %v696_v49 = vpop.f32.mrf.mxu2 }

</bundles_post_ra>
